<compile_context>
chip_gen: v6e
topology: v6e:2x2x1
jax: 0.10.0
libtpu: 0.0.40
codegen_flags: <defaults>
</compile_context>

<pallas_src>
import math

import jax
import jax.numpy as jnp
from jax.experimental import pallas as pl
from jax.experimental.pallas import tpu as pltpu


def _make_dice_kernel(d, td, smooth):
    """Build the kernel body with static D / tile width / smooth baked in."""
    mask_cols = (d % td) != 0

    def kernel(x_ref, t_ref, loss_ref, inter_ref, psum_ref, msum_ref):
        j = pl.program_id(1)

        @pl.when(j == 0)
        def _init():
            inter_ref[...] = jnp.zeros_like(inter_ref)
            psum_ref[...] = jnp.zeros_like(psum_ref)
            msum_ref[...] = jnp.zeros_like(msum_ref)

        x = x_ref[...].astype(jnp.float32)
        t = t_ref[...].astype(jnp.float32)
        prob = jax.nn.sigmoid(x)                      # EUP/VPU, hidden under DMA

        if mask_cols:
            # Last D tile is ragged: zero out padded lanes (sigmoid(pad)=0.5 would
            # otherwise inflate psum; garbage target padding would inflate inter/msum).
            col = j * td + jax.lax.broadcasted_iota(jnp.int32, prob.shape, 1)
            valid = col < d
            prob = jnp.where(valid, prob, 0.0)
            t = jnp.where(valid, t, 0.0)

        # Per-row partial reductions (XLU), accumulated across D tiles.
        inter_ref[...] += jnp.sum(prob * t, axis=1, keepdims=True)
        psum_ref[...] += jnp.sum(prob, axis=1, keepdims=True)
        msum_ref[...] += jnp.sum(t, axis=1, keepdims=True)

        @pl.when(j == pl.num_programs(1) - 1)
        def _finalize():
            # Runs once per row block; exact division keeps full f32 fidelity and is
            # negligible next to the streaming DMA.
            num = 2.0 * inter_ref[...] + smooth
            den = psum_ref[...] + msum_ref[...] + smooth
            loss_ref[...] = (1.0 - num / den).astype(loss_ref.dtype)

    return kernel


def _choose_tiles(n, d):
    """Pick (TN, TD). TN: multiple of 8 (or full dim when N < 8). TD: lane-dense
    multiple of 128 (or the full dim), sized so double-buffered f32+bf16 inputs stay
    well under the scoped VMEM limit on v5e (16 MiB) and v6e/v7x (32 MiB)."""
    if n < 8:
        tn = n                          # full row dim -- always a legal block dim
    else:
        tn = min(128, (n // 8) * 8)     # 8-aligned; ragged last row block is fine

    budget_bytes = 8 * 1024 * 1024      # for 2 inputs x 2 pipeline buffers
    per_col_bytes = 2 * (4 + 2) * tn    # f32 logits + bf16 target, double-buffered
    td = (budget_bytes // per_col_bytes) // 128 * 128
    td = max(128, min(td, 8192))
    if td >= d:
        td = d                          # single D step; full dim is always legal
    return tn, td


def binary_dice_loss(inp, target, smooth=1.0, reduction="mean",
                     tile_rows=None, tile_cols=None):
    """Pallas TPU implementation of BinaryDiceLoss.forward."""
    assert inp.shape == target.shape, "predict & target batch size don't match"

    n = inp.shape[0]
    d = max(1, math.prod(inp.shape[1:]))
    x2d = inp.reshape(n, d)
    # Binary 0/1 masks are exact in bf16; halving the target's bytes cuts HBM traffic
    # on this memory-bound kernel. All math is upcast to f32 inside the kernel.
    t2d = target.reshape(n, d).astype(jnp.bfloat16)

    tn, td = _choose_tiles(n, d)
    if tile_rows is not None:
        tn = tile_rows
    if tile_cols is not None:
        td = tile_cols

    grid = (pl.cdiv(n, tn), pl.cdiv(d, td))   # reduction (D) axis last

    per_row = pl.pallas_call(
        _make_dice_kernel(d, td, float(smooth)),
        out_shape=jax.ShapeDtypeStruct((n, 1), jnp.float32),
        grid_spec=pltpu.PrefetchScalarGridSpec(
            num_scalar_prefetch=0,
            grid=grid,
            in_specs=[
                pl.BlockSpec((tn, td), lambda i, j: (i, j)),   # logits tile
                pl.BlockSpec((tn, td), lambda i, j: (i, j)),   # target tile (bf16)
            ],
            # Output block index is independent of j -> resident across the D axis.
            out_specs=pl.BlockSpec((tn, 1), lambda i, j: (i, 0)),
            scratch_shapes=[
                pltpu.VMEM((tn, 1), jnp.float32),   # intersection accumulator
                pltpu.VMEM((tn, 1), jnp.float32),   # prob-sum accumulator
                pltpu.VMEM((tn, 1), jnp.float32),   # mask-sum accumulator
            ],
        ),
        compiler_params=pltpu.CompilerParams(
            dimension_semantics=("parallel", "arbitrary"),
        ),
    )(x2d, t2d)

    loss = per_row[:, 0]
    if reduction == "mean":
        return loss.mean()
    elif reduction == "sum":
        return loss.sum()
    elif reduction == "none":
        return loss
    else:
        raise Exception("Unexpected reduction {}".format(reduction))


def _reference(inp, target, smooth=1.0, reduction="mean"):
    n = inp.shape[0]
    prob = jax.nn.sigmoid(inp.astype(jnp.float32)).reshape(n, -1)
    mask = target.astype(jnp.float32).reshape(n, -1)
    inter = (prob * mask).sum(1)
    loss = 1.0 - (2.0 * inter + smooth) / (prob.sum(1) + mask.sum(1) + smooth)
    if reduction == "mean":
        return loss.mean()
    if reduction == "sum":
        return loss.sum()
    return loss


if __name__ == "__main__":
    key = jax.random.PRNGKey(0)
    k1, k2, k3, k4 = jax.random.split(key, 4)

    # --- Test 1: NCHW logits + 0/1 mask, small shapes (single-tile fast path) ---
    N, C, H, W = 2, 4, 16, 16
    logits = jax.random.normal(k1, (N, C, H, W), dtype=jnp.float32)
    target = (jax.random.uniform(k2, (N, C, H, W)) > 0.5).astype(jnp.float32)

    loss = binary_dice_loss(logits, target)
    jax.block_until_ready(loss)
    ref = _reference(logits, target)
    assert jnp.allclose(loss, ref, atol=1e-5, rtol=1e-5), (loss, ref)

    # --- Test 2: ragged N and D with forced small tiles to exercise the multi-step
    #     accumulator + column-masking path, and all reductions ---
    N2, C2, H2, W2 = 10, 3, 13, 11          # D = 429 (not a multiple of 128)
    logits2 = jax.random.normal(k3, (N2, C2, H2, W2), dtype=jnp.float32)
    target2 = (jax.random.uniform(k4, (N2, C2, H2, W2)) > 0.5).astype(jnp.float32)

    for red in ("mean", "sum", "none"):
        got = binary_dice_loss(logits2, target2, smooth=1.0, reduction=red,
                               tile_rows=8, tile_cols=128)
        jax.block_until_ready(got)
        want = _reference(logits2, target2, smooth=1.0, reduction=red)
        assert jnp.allclose(got, want, atol=1e-5, rtol=1e-5), (red, got, want)

    print("KERNEL_OK")
</pallas_src>

<mosaic_0001>
module attributes {stable_mosaic.version = 11 : i64} {
  func.func @kernel(%arg0: i32, %arg1: i32, %arg2: memref<2x1024xf32, #tpu.memory_space<vmem>>, %arg3: memref<2x1024xbf16, #tpu.memory_space<vmem>>, %arg4: memref<2x1xf32, #tpu.memory_space<vmem>>, %arg5: memref<2x1xf32, #tpu.memory_space<vmem>>, %arg6: memref<2x1xf32, #tpu.memory_space<vmem>>, %arg7: memref<2x1xf32, #tpu.memory_space<vmem>>) attributes {dimension_semantics = [#tpu.dimension_semantics<parallel>, #tpu.dimension_semantics<arbitrary>], iteration_bounds = array<i64: 1, 1>, scalar_prefetch = 0 : i64, scratch_operands = 3 : i64, tpu.core_type = #tpu.core_type<tc>, window_params = [{transform_indices = @transform_0, window_bounds = array<i64: 2, 1024>}, {transform_indices = @transform_1, window_bounds = array<i64: 2, 1024>}, {transform_indices = @transform_2, window_bounds = array<i64: 2, 1>}]} {
    %c0_i32 = arith.constant 0 : i32
    %0 = arith.cmpi eq, %arg1, %c0_i32 : i32
    %1 = arith.extui %0 : i1 to i32
    %c0_i32_0 = arith.constant 0 : i32
    %2 = arith.cmpi ne, %1, %c0_i32_0 : i32
    scf.if %2 {
      %cst_21 = arith.constant 0.000000e+00 : f32
      %30 = vector.broadcast %cst_21 : f32 to vector<2x1xf32>
      %c0_22 = arith.constant 0 : index
      %c0_23 = arith.constant 0 : index
      %31 = vector.load %arg5[%c0_22, %c0_23] : memref<2x1xf32, #tpu.memory_space<vmem>>, vector<2x1xf32>
      tpu.vector_store %arg5[%c0_22, %c0_23], %30 {strides = array<i32>} : memref<2x1xf32, #tpu.memory_space<vmem>>, vector<2x1xf32>,
      %cst_24 = arith.constant 0.000000e+00 : f32
      %32 = vector.broadcast %cst_24 : f32 to vector<2x1xf32>
      %c0_25 = arith.constant 0 : index
      %c0_26 = arith.constant 0 : index
      %33 = vector.load %arg6[%c0_25, %c0_26] : memref<2x1xf32, #tpu.memory_space<vmem>>, vector<2x1xf32>
      tpu.vector_store %arg6[%c0_25, %c0_26], %32 {strides = array<i32>} : memref<2x1xf32, #tpu.memory_space<vmem>>, vector<2x1xf32>,
      %cst_27 = arith.constant 0.000000e+00 : f32
      %34 = vector.broadcast %cst_27 : f32 to vector<2x1xf32>
      %c0_28 = arith.constant 0 : index
      %c0_29 = arith.constant 0 : index
      %35 = vector.load %arg7[%c0_28, %c0_29] : memref<2x1xf32, #tpu.memory_space<vmem>>, vector<2x1xf32>
      tpu.vector_store %arg7[%c0_28, %c0_29], %34 {strides = array<i32>} : memref<2x1xf32, #tpu.memory_space<vmem>>, vector<2x1xf32>,
    } else {
    }
    %c0 = arith.constant 0 : index
    %c0_1 = arith.constant 0 : index
    %3 = vector.load %arg2[%c0, %c0_1] : memref<2x1024xf32, #tpu.memory_space<vmem>>, vector<2x1024xf32>
    %c0_2 = arith.constant 0 : index
    %c0_3 = arith.constant 0 : index
    %4 = vector.load %arg3[%c0_2, %c0_3] : memref<2x1024xbf16, #tpu.memory_space<vmem>>, vector<2x1024xbf16>
    %5 = arith.extf %4 : vector<2x1024xbf16> to vector<2x1024xf32>
    %6 = arith.negf %3 : vector<2x1024xf32>
    %7 = math.exp %6 : vector<2x1024xf32>
    %cst = arith.constant 1.000000e+00 : f32
    %8 = vector.broadcast %cst : f32 to vector<2x1024xf32>
    %9 = arith.addf %8, %7 : vector<2x1024xf32>
    %10 = arith.divf %8, %9 : vector<2x1024xf32>
    %c0_4 = arith.constant 0 : index
    %c0_5 = arith.constant 0 : index
    %11 = vector.load %arg5[%c0_4, %c0_5] : memref<2x1xf32, #tpu.memory_space<vmem>>, vector<2x1xf32>
    %12 = arith.mulf %10, %5 : vector<2x1024xf32>
    %cst_6 = arith.constant dense<0.000000e+00> : vector<2xf32>
    %13 = vector.multi_reduction <add>, %12, %cst_6 [1] : vector<2x1024xf32> to vector<2xf32>
    %14 = vector.shape_cast %13 : vector<2xf32> to vector<2x1xf32>
    %15 = arith.addf %11, %14 : vector<2x1xf32>
    %c0_7 = arith.constant 0 : index
    %c0_8 = arith.constant 0 : index
    %16 = vector.load %arg5[%c0_7, %c0_8] : memref<2x1xf32, #tpu.memory_space<vmem>>, vector<2x1xf32>
    tpu.vector_store %arg5[%c0_7, %c0_8], %15 {strides = array<i32>} : memref<2x1xf32, #tpu.memory_space<vmem>>, vector<2x1xf32>,
    %c0_9 = arith.constant 0 : index
    %c0_10 = arith.constant 0 : index
    %17 = vector.load %arg6[%c0_9, %c0_10] : memref<2x1xf32, #tpu.memory_space<vmem>>, vector<2x1xf32>
    %cst_11 = arith.constant dense<0.000000e+00> : vector<2xf32>
    %18 = vector.multi_reduction <add>, %10, %cst_11 [1] : vector<2x1024xf32> to vector<2xf32>
    %19 = vector.shape_cast %18 : vector<2xf32> to vector<2x1xf32>
    %20 = arith.addf %17, %19 : vector<2x1xf32>
    %c0_12 = arith.constant 0 : index
    %c0_13 = arith.constant 0 : index
    %21 = vector.load %arg6[%c0_12, %c0_13] : memref<2x1xf32, #tpu.memory_space<vmem>>, vector<2x1xf32>
    tpu.vector_store %arg6[%c0_12, %c0_13], %20 {strides = array<i32>} : memref<2x1xf32, #tpu.memory_space<vmem>>, vector<2x1xf32>,
    %c0_14 = arith.constant 0 : index
    %c0_15 = arith.constant 0 : index
    %22 = vector.load %arg7[%c0_14, %c0_15] : memref<2x1xf32, #tpu.memory_space<vmem>>, vector<2x1xf32>
    %cst_16 = arith.constant dense<0.000000e+00> : vector<2xf32>
    %23 = vector.multi_reduction <add>, %5, %cst_16 [1] : vector<2x1024xf32> to vector<2xf32>
    %24 = vector.shape_cast %23 : vector<2xf32> to vector<2x1xf32>
    %25 = arith.addf %22, %24 : vector<2x1xf32>
    %c0_17 = arith.constant 0 : index
    %c0_18 = arith.constant 0 : index
    %26 = vector.load %arg7[%c0_17, %c0_18] : memref<2x1xf32, #tpu.memory_space<vmem>>, vector<2x1xf32>
    tpu.vector_store %arg7[%c0_17, %c0_18], %25 {strides = array<i32>} : memref<2x1xf32, #tpu.memory_space<vmem>>, vector<2x1xf32>,
    %c0_i32_19 = arith.constant 0 : i32
    %27 = arith.cmpi eq, %arg1, %c0_i32_19 : i32
    %28 = arith.extui %27 : i1 to i32
    %c0_i32_20 = arith.constant 0 : i32
    %29 = arith.cmpi ne, %28, %c0_i32_20 : i32
    scf.if %29 {
      %c0_21 = arith.constant 0 : index
      %c0_22 = arith.constant 0 : index
      %30 = vector.load %arg5[%c0_21, %c0_22] : memref<2x1xf32, #tpu.memory_space<vmem>>, vector<2x1xf32>
      %cst_23 = arith.constant 2.000000e+00 : f32
      %31 = vector.broadcast %cst_23 : f32 to vector<2x1xf32>
      %32 = arith.mulf %31, %30 : vector<2x1xf32>
      %cst_24 = arith.constant 1.000000e+00 : f32
      %33 = vector.broadcast %cst_24 : f32 to vector<2x1xf32>
      %34 = arith.addf %32, %33 : vector<2x1xf32>
      %c0_25 = arith.constant 0 : index
      %c0_26 = arith.constant 0 : index
      %35 = vector.load %arg6[%c0_25, %c0_26] : memref<2x1xf32, #tpu.memory_space<vmem>>, vector<2x1xf32>
      %c0_27 = arith.constant 0 : index
      %c0_28 = arith.constant 0 : index
      %36 = vector.load %arg7[%c0_27, %c0_28] : memref<2x1xf32, #tpu.memory_space<vmem>>, vector<2x1xf32>
      %37 = arith.addf %35, %36 : vector<2x1xf32>
      %cst_29 = arith.constant 1.000000e+00 : f32
      %38 = vector.broadcast %cst_29 : f32 to vector<2x1xf32>
      %39 = arith.addf %37, %38 : vector<2x1xf32>
      %40 = arith.divf %34, %39 : vector<2x1xf32>
      %cst_30 = arith.constant 1.000000e+00 : f32
      %41 = vector.broadcast %cst_30 : f32 to vector<2x1xf32>
      %42 = arith.subf %41, %40 : vector<2x1xf32>
      %c0_31 = arith.constant 0 : index
      %c0_32 = arith.constant 0 : index
      %43 = vector.load %arg4[%c0_31, %c0_32] : memref<2x1xf32, #tpu.memory_space<vmem>>, vector<2x1xf32>
      tpu.vector_store %arg4[%c0_31, %c0_32], %42 {strides = array<i32>} : memref<2x1xf32, #tpu.memory_space<vmem>>, vector<2x1xf32>,
    } else {
    }
    return
  }
  func.func @transform_0(%arg0: i32, %arg1: i32) -> (i32, i32) {
    %c0_i32 = arith.constant 0 : i32
    return %arg0, %arg1 : i32, i32
  }
  func.func @transform_1(%arg0: i32, %arg1: i32) -> (i32, i32) {
    %c0_i32 = arith.constant 0 : i32
    return %arg0, %arg1 : i32, i32
  }
  func.func @transform_2(%arg0: i32, %arg1: i32) -> (i32, i32) {
    %c0_i32 = arith.constant 0 : i32
    %c0_i32_0 = arith.constant 0 : i32
    return %arg0, %c0_i32 : i32, i32
  }
}

</mosaic_0001>

<bundles_post_ra>
// kernel: tpu_custom_call.1
= control target key start
LH: loop header
LB: loop body
LE: loop exit
PB: predicated region body
PF: predicated region fallthrough
CT: control target
= control target key end

     0   :  { %7 = vsyncpa [#allocation6], 0  ;;  %s395_s0 = inlined_call_operand.hbm [shape: f32[2,1024], index: 0, kind: input, shape index: {}]   ;;  %s396_s1 = inlined_call_operand.hbm [shape: bf16[2,1024], index: 1, kind: input, shape index: {}]   ;;  %s397_s2 = inlined_call_operand.vmem [shape: f32[2,1], index: 2, kind: output, shape index: {}]  }
   0x1   :  { %8 = vsyncpa [#allocation8], 0  ;;  %s336_s9 = smov [#allocation5]   ;;  %s337_s11 = smov [#allocation7]  }
   0x2   :  { %s15_s10 = sshll.u32 %s336_s9, 4  ;;  %s25_s12 = sshll.u32 %s337_s11, 4  ;;  %s16_s10 = int_to_ptr.vmem [resolvable:$true] %s15_s10  ;;  %s26_s12 = int_to_ptr.vmem [resolvable:$true] %s25_s12 }
   0x3   :  { %s300_s13 = scalar_lea.vmem %s16_s10, 256  ;;  %p305_p1 = scmp.lt.s32.totalorder %s16_s10, %s16_s10 }
   0x4   :  { %p301_p0 = scmp.ne.s32.totalorder %s16_s10, %s300_s13  ;;  %p306_p2 = scmp.lt.s32.totalorder %s300_s13, %s300_s13 }
   0x6   :  { %p307_p3 = por %p306_p2, %p305_p1 }
   0x8   :  { %p308_p4 = pnand %p307_p3, %p301_p0 }
   0xa   :  { %311 = shalt.err (!%p308_p4)
}
   0xb   :  { %18 = dma.hbm_to_vmem [thread:$0]  %s395_s0, 256, %s16_s10, [#allocation6]  }
   0xc   :  { %s320_s16 = scalar_lea.vmem %s26_s12, 128  ;;  %p325_p6 = scmp.lt.s32.totalorder %s26_s12, %s26_s12 }
   0xd   :  { %p321_p5 = scmp.ne.s32.totalorder %s26_s12, %s320_s16  ;;  %p326_p7 = scmp.lt.s32.totalorder %s320_s16, %s320_s16 }
   0xf   :  { %p327_p8 = por %p326_p7, %p325_p6 }
  0x11   :  { %p328_p9 = pnand %p327_p8, %p321_p5 }
  0x13   :  { %331 = shalt.err (!%p328_p9)
}
  0x14   :  { %28 = dma.hbm_to_vmem [thread:$0]  %s396_s1, 128, %s26_s12, [#allocation8]  }
  0x15   :  { %332 = dma.done.wait [#allocation6], 256  }
  0x16   :  { %333 = vsyncadd [#allocation6], 4294967040 }
  0x17   :  { %334 = dma.done.wait [#allocation8], 128  }
  0x18   :  { %335 = vsyncadd [#allocation8], 4294967168  ;;  %vm39_vm0 = vcmask 1024   ;;  %v338_v0 = vmov 0.0   ;;  %v43_v1 = vld [vmem:[#allocation5] sm:$0xff]  ;;  %v44_v2 = vld [vmem:[#allocation5 + $0x8] sm:$0xff]  ;;  %v69_v7 = vlaneseq }
  0x19   :  { %41 = vst.msk [vmem:[#allocation3] sm:$0x3] %vm39_vm0, %v338_v0  ;;  %40 = vst.msk [vmem:[#allocation2] sm:$0x3] %vm39_vm0, %v338_v0  ;;  %v276_v3 = vmul.f32 -1.442695, %v43_v1 }
  0x1a   :  { %42 = vst.msk [vmem:[#allocation4] sm:$0x3] %vm39_vm0, %v338_v0  ;;  %v277_v4 = vmul.f32 -1.442695, %v44_v2  ;;  %v339_v5 = vmov 1983009808  }
  0x1b   :  { %282 = vpow2.f32 %v276_v3  ;;  %v67_v6 = vunpack.c.l.s4 %v339_v5  ;;  %v45_v8 = vld [vmem:[#allocation7] sm:$0xff]  ;;  %v70_v10 = vshrl.u32 %v69_v7, 7  ;;  %vm107_vm1 = vcmask 1041408  }
  0x1c   :  { %284 = vpow2.f32 %v277_v4  ;;  %v46_v11 = vunpack.c.l.bf16 %v45_v8  ;;  %v47_v23 = vunpack.c.h.bf16 %v45_v8 }
  0x1d   :  { %v68_v9 = vunpack.c.0.s8 %v67_v6 }
  0x1e   :  { %v195_v18 = vcombine.high %v46_v11, %v46_v11  ;;  %v212_v37 = vcombine.high %v47_v23, %v47_v23 }
  0x1f   :  { %v71_v12 = vsub.s32 %v68_v9, %v70_v10 }
  0x21   :  { %v202_v16 = vrot.slane %v46_v11, %v71_v12  ;;  %v209_v20 = vrot.slane %v195_v18, %v71_v12  ;;  %v219_v27 = vrot.slane %v47_v23, %v71_v12  ;;  %v226_v54 = vrot.slane %v212_v37, %v71_v12  ;;  %v60_v37 = vld [vmem:[#allocation2] sm:$0x3] }
  0x23   :  { %v210_v19 = vcombine.high %v202_v16, %v202_v16  ;;  %v237_v21 = vsel %vm107_vm1, %v202_v16, 0.0  ;;  %v211_v25 = vcombine.high %v209_v20, %v209_v20  ;;  %v240_v26 = vsel %vm107_vm1, %v209_v20, 0.0 }
  0x24   :  { %v227_v38 = vcombine.high %v219_v27, %v219_v27  ;;  %v244_v44 = vsel %vm107_vm1, %v219_v27, 0.0  ;;  %v248_v16 = vsel %vm107_vm1, %v226_v54, 0.0 }
  0x25   :  { %v238_v22 = vsel %vm107_vm1, %v210_v19, 0.0  ;;  %v242_v33 = vsel %vm107_vm1, %v211_v25, 0.0 }
  0x26   :  { %v239_v24 = vadd.f32 %v238_v22, %v237_v21  ;;  %v246_v0 = vsel %vm107_vm1, %v227_v38, 0.0 }
  0x28   :  { %v283_v13 = vpop.eup %282  ;;  %v241_v29 = vadd.f32 %v240_v26, %v239_v24 }
  0x29   :  { %v285_v14 = vpop.eup %284  ;;  %v54_v15 = vadd.f32 1.0, %v283_v13 }
  0x2a   :  { %v55_v17 = vadd.f32 1.0, %v285_v14  ;;  %v243_v43 = vadd.f32 %v242_v33, %v241_v29  ;;  %v128_v33 = vld [vmem:[#allocation3] sm:$0x3] }
  0x2b   :  { %286 = vrcp.f32 %v54_v15  ;;  %v228_v15 = vcombine.high %v226_v54, %v226_v54 }
  0x2c   :  { %288 = vrcp.f32 %v55_v17  ;;  %v245_v60 = vadd.f32 %v244_v44, %v243_v43 }
  0x2d   :  { %v250_v25 = vsel %vm107_vm1, %v228_v15, 0.0 }
  0x38   :  { %v287_v28 = vpop.eup %286 }
  0x39   :  { %v289_v30 = vpop.eup %288  ;;  %v131_v31 = vcombine.high %v287_v28, %v287_v28  ;;  %v138_v32 = vrot.slane %v287_v28, %v71_v12  ;;  %v61_v34 = vmul.f32 %v287_v28, %v46_v11  ;;  %v247_v11 = vadd.f32 %v246_v0, %v245_v60 }
  0x3a   :  { %v148_v35 = vcombine.high %v289_v30, %v289_v30  ;;  %v155_v36 = vrot.slane %v289_v30, %v71_v12  ;;  %v62_v45 = vmul.f32 %v289_v30, %v47_v23 }
  0x3b   :  { %v145_v39 = vrot.slane %v131_v31, %v71_v12  ;;  %v146_v40 = vcombine.high %v138_v32, %v138_v32  ;;  %v173_v41 = vsel %vm107_vm1, %v138_v32, 0.0  ;;  %v65_v42 = vcombine.high %v61_v34, %v61_v34 }
  0x3c   :  { %v72_v46 = vrot.slane %v61_v34, %v71_v12  ;;  %v162_v51 = vrot.slane %v148_v35, %v71_v12  ;;  %v163_v52 = vcombine.high %v155_v36, %v155_v36  ;;  %v82_v58 = vcombine.high %v62_v45, %v62_v45 }
  0x3d   :  { %v147_v47 = vcombine.high %v145_v39, %v145_v39  ;;  %v174_v48 = vsel %vm107_vm1, %v146_v40, 0.0  ;;  %v176_v49 = vsel %vm107_vm1, %v145_v39, 0.0  ;;  %v79_v50 = vrot.slane %v65_v42, %v71_v12 }
  0x3e   :  { %v175_v53 = vadd.f32 %v174_v48, %v173_v41  ;;  %v80_v56 = vcombine.high %v72_v46, %v72_v46  ;;  %v89_v61 = vrot.slane %v62_v45, %v71_v12  ;;  %v108_v62 = vsel %vm107_vm1, %v72_v46, 0.0 }
  0x3f   :  { %v178_v55 = vsel %vm107_vm1, %v147_v47, 0.0  ;;  %v81_v57 = vcombine.high %v79_v50, %v79_v50  ;;  %v180_v63 = vsel %vm107_vm1, %v155_v36, 0.0  ;;  %v111_v2 = vsel %vm107_vm1, %v79_v50, 0.0  ;;  %v192_v36 = vld [vmem:[#allocation4] sm:$0x3] }
  0x40   :  { %v177_v59 = vadd.f32 %v176_v49, %v175_v53  ;;  %v109_v1 = vsel %vm107_vm1, %v80_v56, 0.0  ;;  %v164_v3 = vcombine.high %v162_v51, %v162_v51  ;;  %v182_v6 = vsel %vm107_vm1, %v163_v52, 0.0 }
  0x41   :  { %v110_v5 = vadd.f32 %v109_v1, %v108_v62  ;;  %v96_v7 = vrot.slane %v82_v58, %v71_v12  ;;  %v97_v8 = vcombine.high %v89_v61, %v89_v61  ;;  %v113_v9 = vsel %vm107_vm1, %v81_v57, 0.0 }
  0x42   :  { %v179_v4 = vadd.f32 %v178_v55, %v177_v59  ;;  %v184_v14 = vsel %vm107_vm1, %v162_v51, 0.0  ;;  %v115_v17 = vsel %vm107_vm1, %v89_v61, 0.0  ;;  %v186_v20 = vsel %vm107_vm1, %v164_v3, 0.0 }
  0x43   :  { %v112_v13 = vadd.f32 %v111_v2, %v110_v5  ;;  %v98_v21 = vcombine.high %v96_v7, %v96_v7  ;;  %v117_v12 = vsel %vm107_vm1, %v97_v8, 0.0  ;;  %v249_v23 = vadd.f32 %v248_v16, %v247_v11 }
  0x44   :  { %v181_v10 = vadd.f32 %v180_v63, %v179_v4  ;;  %v119_v26 = vsel %vm107_vm1, %v96_v7, 0.0 }
  0x45   :  { %v114_v19 = vadd.f32 %v113_v9, %v112_v13  ;;  %v121_v29 = vsel %vm107_vm1, %v98_v21, 0.0  ;;  %v251_v30 = vadd.f32 %v250_v25, %v249_v23 }
  0x46   :  { %v183_v18 = vadd.f32 %v182_v6, %v181_v10 }
  0x47   :  { %v116_v24 = vadd.f32 %v115_v17, %v114_v19 }
  0x48   :  { %v185_v22 = vadd.f32 %v184_v14, %v183_v18 }
  0x49   :  { %v118_v28 = vadd.f32 %v117_v12, %v116_v24 }
  0x4a   :  { %v187_v27 = vadd.f32 %v186_v20, %v185_v22 }
  0x4b   :  { %v120_v31 = vadd.f32 %v119_v26, %v118_v28 }
  0x4c   :  { %188 = vadd.xlane.f32.xlu0 %v187_v27 }
  0x4d   :  { %v122_v32 = vadd.f32 %v121_v29, %v120_v31 }
  0x4f   :  { %123 = vadd.xlane.f32.xlu1 %v122_v32 }
  0x50   :  { %252 = vadd.xlane.f32.xlu0 %v251_v30 }
  0xd5   :  { %v189_v34 = vpop.xlane.xlu0 %188 }
  0xd6   :  { %v190_v35 = vadd.f32 %v189_v34, %v128_v33 }
  0xd8   :  { %191 = vst.msk [vmem:[#allocation3] sm:$0x3] %vm39_vm0, %v190_v35  ;;  %v124_v39 = vpop.xlane.xlu1 %123 }
  0xd9   :  { %v253_v38 = vpop.xlane.xlu0 %252  ;;  %v125_v41 = vadd.f32 %v124_v39, %v60_v37 }
  0xda   :  { %v254_v40 = vadd.f32 %v253_v38, %v192_v36 }
  0xdb   :  { %127 = vst.msk [vmem:[#allocation2] sm:$0x3] %vm39_vm0, %v125_v41 }
  0xdc   :  { %255 = vst.msk [vmem:[#allocation4] sm:$0x3] %vm39_vm0, %v254_v40 }
  0xdf   :  { %v262_v42 = vld [vmem:[#allocation3] sm:$0x3] }
  0xe2   :  { %v259_v46 = vld [vmem:[#allocation2] sm:$0x3] }
  0xe3   :  { %v263_v43 = vld [vmem:[#allocation4] sm:$0x3]  ;;  %v260_v47 = vmul.f32 2.0, %v259_v46 }
  0xe4   :  { %v264_v44 = vadd.f32 %v263_v43, %v262_v42 }
  0xe5   :  { %v261_v48 = vadd.f32 1.0, %v260_v47 }
  0xe6   :  { %v265_v45 = vadd.f32 1.0, %v264_v44 }
  0xe8   :  { %290 = vrcp.f32 %v265_v45 }
  0xf5   :  { %v291_v49 = vpop.eup %290 }
  0xf6   :  { %v267_v50 = vmul.f32 %v291_v49, %v261_v48 }
  0xf8   :  { %v268_v51 = vsub.f32 1.0, %v267_v50 }
  0xfa   :  { %269 = vst.msk [vmem:[%s397_s2] sm:$0x3] %vm39_vm0, %v268_v51 }
  0xfb   :  { %274 = vsyncpa [#allocation6], 1 }
  0xfc   :  { %275 = vsyncpa [#allocation8], 1 }

</bundles_post_ra>
